<compile_context>
chip_gen: v5e
topology: v5e:2x2
jax: 0.10.0
libtpu: 0.0.40
codegen_flags: <defaults>
</compile_context>

<pallas_src>
import math

import jax
import jax.numpy as jnp
from jax.experimental import pallas as pl
from jax.experimental.pallas import tpu as pltpu


def _pe_add_kernel(scale_ref, x_ref, pe_ref, o_ref):
    # scale_ref: SMEM (1, 1) learnable scale
    # x_ref/o_ref: VMEM (TS, D) tile (batch dim squeezed away by BlockSpec)
    # pe_ref:      VMEM (TS, D) tile; same block index across the inner batch loop
    scale = scale_ref[0, 0]
    acc = x_ref[...].astype(jnp.float32) + scale * pe_ref[...].astype(jnp.float32)
    o_ref[...] = acc.astype(o_ref.dtype)


def build_sinusoidal_pe(max_seq_len: int, d_model: int, base: float = 10000.0,
                        dtype=jnp.float32):
    """Matches the PyTorch __init__ buffer construction; dtype selectable so the
    table can live in the activation dtype (halves PE HBM traffic for bf16)."""
    position = jnp.arange(max_seq_len, dtype=jnp.float32)[:, None]            # (S, 1)
    div_term = jnp.exp(
        jnp.arange(0, d_model, 2, dtype=jnp.float32) * -(math.log(base) / d_model)
    )                                                                          # (D/2,)
    angles = position * div_term                                               # (S, D/2)
    pe = jnp.zeros((max_seq_len, d_model), dtype=jnp.float32)
    pe = pe.at[:, 0::2].set(jnp.sin(angles))
    pe = pe.at[:, 1::2].set(jnp.cos(angles))
    return pe.astype(dtype)


def _tpu_tuning():
    """(target x-tile bytes, scoped VMEM limit bytes) per TPU generation."""
    try:
        kind = jax.devices()[0].device_kind.lower()
    except Exception:
        kind = ""
    if "v7" in kind:            # 64 MiB physical VMEM per TC, ~3.2 TB/s HBM
        return 4 << 20, 48 << 20
    if "v6" in kind:            # 128 MiB physical VMEM: go largest
        return 8 << 20, 96 << 20
    if "v5" in kind:            # ~820 GB/s HBM: ~2 MiB already near roofline
        return 2 << 20, 64 << 20
    return 4 << 20, 48 << 20    # unknown generation: conservative middle ground


def _sublane_multiple(itemsize: int) -> int:
    # f32 packs 8 rows/vreg, bf16 16, int8/fp8 32 — keep TS on that grid.
    return {4: 8, 2: 16, 1: 32}.get(itemsize, 8)


def _choose_rows(S, D, x_itemsize, pe_itemsize, target_bytes, vmem_limit_bytes,
                 min_tiles=1):
    """Rows per tile: sized by the per-generation byte target, clamped so the
    double-buffered footprint 2*(x + out + pe) stays well under the scoped VMEM
    limit; rounded to the dtype-aware sublane multiple; exact divisors of S
    preferred so pe block reads never run past the table."""
    sub = _sublane_multiple(x_itemsize)
    per_row = D * (2 * x_itemsize + pe_itemsize)                 # x in + out + pe
    rows_target = target_bytes // max(1, D * x_itemsize)
    rows_vmem = (vmem_limit_bytes * 3 // 8) // max(1, per_row)   # 2x buffers + slack
    max_rows = max(sub, min(rows_target, rows_vmem))
    if min_tiles > 1:                                            # keep 2nd TC busy
        max_rows = min(max_rows, max(sub, -(-S // min_tiles)))
    if S <= max_rows:
        return S                        # full-extent block, always layout-legal
    ts = max(sub, (max_rows // sub) * sub)
    for cand in range(ts, sub - 1, -sub):                        # prefer divisor of S
        if S % cand == 0:
            return cand
    return ts                                                    # ragged last tile


def sinusoidal_pe_forward(x, pe_full, scale):
    """x: (B, S, D); pe_full: (max_seq_len, D); scale: scalar/(1,)."""
    B, S, D = x.shape
    max_seq_len = pe_full.shape[0]
    if S > max_seq_len:
        raise ValueError(f"seq_len {S} exceeds max_seq_len {max_seq_len}")

    x_item = jnp.dtype(x.dtype).itemsize
    target_bytes, vmem_limit = _tpu_tuning()
    min_tiles = 2 if B == 1 else 1      # megacore: ensure >= 2 grid steps exist

    scale_arr = jnp.reshape(jnp.asarray(scale, dtype=jnp.float32), (1, 1))
    cparams = pltpu.CompilerParams(
        dimension_semantics=("parallel", "parallel"),
        vmem_limit_bytes=vmem_limit,
    )

    # ---------- Lane-dense fallback: D not a multiple of 128 -----------------
    if D % 128 != 0 and (S * D) % 128 == 0:
        lanes = 128
        R = (S * D) // lanes
        x_f = x.reshape(B, R, lanes)
        # Tiny S*D wrapper copy; buys full-lane (unmasked) stores in the kernel.
        pe_f = pe_full[:S].astype(x.dtype).reshape(R, lanes)
        pe_item = x_item
        TR = _choose_rows(R, lanes, x_item, pe_item, target_bytes, vmem_limit,
                          min_tiles)
        cost = pl.CostEstimate(
            flops=2 * B * S * D, transcendentals=0,
            bytes_accessed=2 * B * S * D * x_item + S * D * pe_item)
        out_f = pl.pallas_call(
            _pe_add_kernel,
            out_shape=jax.ShapeDtypeStruct((B, R, lanes), x.dtype),
            grid_spec=pltpu.PrefetchScalarGridSpec(
                num_scalar_prefetch=0,
                grid=(pl.cdiv(R, TR), B),   # batch innermost -> pe DMA once/tile
                in_specs=[
                    pl.BlockSpec(memory_space=pltpu.SMEM),                           # scale
                    pl.BlockSpec((pl.Squeezed(), TR, lanes), lambda r, b: (b, r, 0)),  # x
                    pl.BlockSpec((TR, lanes), lambda r, b: (r, 0)),                   # pe
                ],
                out_specs=pl.BlockSpec((pl.Squeezed(), TR, lanes),
                                       lambda r, b: (b, r, 0)),
            ),
            compiler_params=cparams,
            cost_estimate=cost,
        )(scale_arr, x_f, pe_f)
        return out_f.reshape(B, S, D)

    # ---------- Main path: (B, S, D) tiles, full-D (lane-dense) blocks --------
    cast_pe = jnp.dtype(pe_full.dtype) != jnp.dtype(x.dtype)
    pe_item = x_item if cast_pe else jnp.dtype(pe_full.dtype).itemsize
    TS = _choose_rows(S, D, x_item, pe_item, target_bytes, vmem_limit, min_tiles)
    num_seq_tiles = pl.cdiv(S, TS)

    # Keep pe reads in-bounds and in x.dtype; only slice (small S*D copy) when
    # the dtype differs or a ragged last tile would run past the table rows.
    if cast_pe or num_seq_tiles * TS > max_seq_len:
        pe_in = pe_full[:S].astype(x.dtype)
    else:
        pe_in = pe_full                     # no wrapper-side copy of the table

    cost = pl.CostEstimate(
        flops=2 * B * S * D, transcendentals=0,
        bytes_accessed=2 * B * S * D * x_item + S * D * pe_item)

    return pl.pallas_call(
        _pe_add_kernel,
        out_shape=jax.ShapeDtypeStruct((B, S, D), x.dtype),
        grid_spec=pltpu.PrefetchScalarGridSpec(
            num_scalar_prefetch=0,
            # Batch innermost: the pe block index (s, 0) is constant across the
            # inner loop, so each PE tile is DMA'd only once per seq tile.
            grid=(num_seq_tiles, B),
            in_specs=[
                pl.BlockSpec(memory_space=pltpu.SMEM),                         # scale (1,1)
                pl.BlockSpec((pl.Squeezed(), TS, D), lambda s, b: (b, s, 0)),  # x tile
                pl.BlockSpec((TS, D), lambda s, b: (s, 0)),                    # pe rows
            ],
            out_specs=pl.BlockSpec((pl.Squeezed(), TS, D), lambda s, b: (b, s, 0)),
        ),
        compiler_params=cparams,
        cost_estimate=cost,
    )(scale_arr, x, pe_in)


if __name__ == "__main__":
    key = jax.random.PRNGKey(0)
    BASE = 10000.0

    # --- Small, module-consistent shapes: batch=2, seq=8, d_model=32 (lane-dense
    #     flatten path since 32 % 128 != 0 but 8*32 % 128 == 0). ---
    B, S, D = 2, 8, 32
    MAX_SEQ_LEN = 64
    k0, k1, k2 = jax.random.split(key, 3)
    x = jax.random.normal(k0, (B, S, D), dtype=jnp.float32)
    scale = jnp.ones((1,), dtype=jnp.float32)      # learnable_scale=True -> ones(1)
    pe_full = build_sinusoidal_pe(MAX_SEQ_LEN, D, BASE)

    out = jax.block_until_ready(sinusoidal_pe_forward(x, pe_full, scale))
    ref = x + scale[0] * pe_full[None, :S, :]
    assert out.shape == (B, S, D)
    assert jnp.allclose(out, ref, atol=1e-6, rtol=1e-6), "mismatch (small/flatten path)"

    # --- Main path, D multiple of 128, multi-row f32 workload. ---
    B2, S2, D2 = 2, 1024, 128
    MAX2 = 2048
    x2 = jax.random.normal(k1, (B2, S2, D2), dtype=jnp.float32)
    scale2 = jnp.full((1,), 1.25, dtype=jnp.float32)
    pe_full2 = build_sinusoidal_pe(MAX2, D2, BASE)

    out2 = jax.block_until_ready(sinusoidal_pe_forward(x2, pe_full2, scale2))
    ref2 = x2 + scale2[0] * pe_full2[None, :S2, :]
    assert out2.shape == (B2, S2, D2)
    assert jnp.allclose(out2, ref2, atol=1e-5, rtol=1e-5), "mismatch (main path)"

    # --- bf16 activations: dtype-aware sublane rounding + PE cast-to-x.dtype. ---
    B3, S3, D3 = 2, 64, 256
    MAX3 = 128
    x3 = jax.random.normal(k2, (B3, S3, D3), dtype=jnp.float32).astype(jnp.bfloat16)
    scale3 = jnp.ones((1,), dtype=jnp.float32)
    pe_full3 = build_sinusoidal_pe(MAX3, D3, BASE)          # f32 buffer, cast in wrapper

    out3 = jax.block_until_ready(sinusoidal_pe_forward(x3, pe_full3, scale3))
    pe3_bf16 = pe_full3[:S3].astype(jnp.bfloat16)
    ref3 = (x3.astype(jnp.float32)
            + scale3[0] * pe3_bf16.astype(jnp.float32)[None]).astype(jnp.bfloat16)
    assert out3.shape == (B3, S3, D3)
    assert jnp.allclose(out3.astype(jnp.float32), ref3.astype(jnp.float32),
                        atol=1e-2, rtol=1e-2), "mismatch (bf16 path)"

    print("KERNEL_OK")
</pallas_src>

<mosaic_0001>
module attributes {stable_mosaic.version = 11 : i64} {
  func.func @_pe_add_kernel(%arg0: i32, %arg1: i32, %arg2: memref<1x1xf32, #tpu.memory_space<smem>>, %arg3: memref<1x2x128xf32, #tpu.memory_space<vmem>>, %arg4: memref<2x128xf32, #tpu.memory_space<vmem>>, %arg5: memref<1x2x128xf32, #tpu.memory_space<vmem>>) attributes {dimension_semantics = [#tpu.dimension_semantics<parallel>, #tpu.dimension_semantics<parallel>], iteration_bounds = array<i64: 1, 2>, scalar_prefetch = 0 : i64, scratch_operands = 0 : i64, tpu.core_type = #tpu.core_type<tc>, window_params = [{transform_indices = @transform_0, window_bounds = array<i64: 1, 1>}, {transform_indices = @transform_1, window_bounds = array<i64: 1, 2, 128>}, {transform_indices = @transform_2, window_bounds = array<i64: 2, 128>}, {transform_indices = @transform_3, window_bounds = array<i64: 1, 2, 128>}]} {
    %c0 = arith.constant 0 : index
    %c0_0 = arith.constant 0 : index
    %0 = memref.load %arg2[%c0, %c0_0] : memref<1x1xf32, #tpu.memory_space<smem>>
    %c0_1 = arith.constant 0 : index
    %c0_2 = arith.constant 0 : index
    %c0_3 = arith.constant 0 : index
    %1 = vector.load %arg3[%c0_1, %c0_2, %c0_3] : memref<1x2x128xf32, #tpu.memory_space<vmem>>, vector<1x2x128xf32>
    %2 = vector.shape_cast %1 : vector<1x2x128xf32> to vector<2x128xf32>
    %c0_4 = arith.constant 0 : index
    %c0_5 = arith.constant 0 : index
    %3 = vector.load %arg4[%c0_4, %c0_5] : memref<2x128xf32, #tpu.memory_space<vmem>>, vector<2x128xf32>
    %4 = vector.broadcast %0 : f32 to vector<2x128xf32>
    %5 = arith.mulf %4, %3 : vector<2x128xf32>
    %6 = arith.addf %2, %5 : vector<2x128xf32>
    %c0_6 = arith.constant 0 : index
    %c0_7 = arith.constant 0 : index
    %c0_8 = arith.constant 0 : index
    %7 = vector.load %arg5[%c0_6, %c0_7, %c0_8] : memref<1x2x128xf32, #tpu.memory_space<vmem>>, vector<1x2x128xf32>
    %8 = vector.shape_cast %7 : vector<1x2x128xf32> to vector<2x128xf32>
    %9 = vector.shape_cast %6 : vector<2x128xf32> to vector<1x2x128xf32>
    tpu.vector_store %arg5[%c0_6, %c0_7, %c0_8], %9 {strides = array<i32>} : memref<1x2x128xf32, #tpu.memory_space<vmem>>, vector<1x2x128xf32>,
    return
  }
  func.func @transform_0(%arg0: i32, %arg1: i32) -> (i32, i32) {
    %c0_i32 = arith.constant 0 : i32
    %c0_i32_0 = arith.constant 0 : i32
    %c0_i32_1 = arith.constant 0 : i32
    return %c0_i32, %c0_i32_0 : i32, i32
  }
  func.func @transform_1(%arg0: i32, %arg1: i32) -> (i32, i32, i32) {
    %c0_i32 = arith.constant 0 : i32
    %c0_i32_0 = arith.constant 0 : i32
    return %arg1, %arg0, %c0_i32 : i32, i32, i32
  }
  func.func @transform_2(%arg0: i32, %arg1: i32) -> (i32, i32) {
    %c0_i32 = arith.constant 0 : i32
    %c0_i32_0 = arith.constant 0 : i32
    return %arg0, %c0_i32 : i32, i32
  }
  func.func @transform_3(%arg0: i32, %arg1: i32) -> (i32, i32, i32) {
    %c0_i32 = arith.constant 0 : i32
    %c0_i32_0 = arith.constant 0 : i32
    return %arg1, %arg0, %c0_i32 : i32, i32, i32
  }
}

</mosaic_0001>

<bundles_post_ra>
// kernel: tpu_custom_call.1
= control target key start
LH: loop header
LB: loop body
LE: loop exit
PB: predicated region body
PF: predicated region fallthrough
CT: control target
= control target key end

     0   :  { %s678_s0 = inlined_call_operand.<no memory space> [shape: f32[1,1], index: 0, kind: input, shape index: {}]   ;;  %s679_s1 = inlined_call_operand.hbm [shape: f32[2,2,128], index: 1, kind: input, shape index: {}]   ;;  %s680_s2 = inlined_call_operand.vmem [shape: f32[2,128], index: 2, kind: input, shape index: {}]   ;;  %s681_s3 = inlined_call_operand.hbm [shape: f32[2,2,128], index: 3, kind: output, shape index: {}]  }
   0x1   :  { %8 = sst [smem:[#allocation2]] %s678_s0 }
   0x2   :  { %9 = vsyncpa [#allocation4], 0 }
   0x3   :  { %11 = vsyncpa [#allocation4 + $0x1], 0 }
   0x4   :  { %12 = vsyncpa [#allocation5], 0 }
   0x5   :  { %14 = vsyncpa [#allocation5 + $0x1], 0  ;;  %s555_s14 = smov 0   ;;  %s557_s15 = smov 0  }
   0x6   :  { %s559_s16 = smov 0   ;;  %s561_s17 = smov 0  }
   0x7   :  { %s563_s18 = smov 0   ;;  %s565_s19 = smov 0  }
   0x8 LB: > { %s342_s0 = sadd.s32 4294967295, %s530_s19   ;;  %s343_s20 = sadd.s32 4294967294, %s530_s19   ;;  %s530_s19 = sphi %s565_s19, %s20_s19   ;;  %s526_s18 = sphi %s563_s18, %s690_s18   ;;  %s522_s17 = sphi %s561_s17, %s689_s17   ;;  %s518_s16 = sphi %s559_s16, %s688_s16   ;;  %s514_s15 = sphi %s557_s15, %s687_s15   ;;  %s510_s14 = sphi %s555_s14, %s686_s14  }
   0x9   : > { %s29_s21 = sadd.s32 1, %s526_s18  ;;  %s62_s22 = sadd.s32 1, %s518_s16 }
   0xa   : > { %p30_p0 = scmp.ge.s32.totalorder %s29_s21, 2  ;;  %p69_p1 = scmp.ne.s32.totalorder %s518_s16, %s514_s15 }
   0xb   : > { %p70_p2 = scmp.eq.s32.totalorder %s530_s19, 0  ;;  %p75_p3 = scmp.ne.s32.totalorder %s514_s15, %s510_s14 }
   0xc   : > { %s692_s21 = smov (%p30_p0, %s29_s21), 0  ;;  %p76_p5 = scmp.eq.s32.totalorder %s342_s0, 0 }
   0xd   : > { %p596_p4 = por %p70_p2, %p69_p1  ;;  %s57_s24 = ssub.s32 %s526_s18, %s692_s21 }
   0xe   : > { %p127_p6 = scmp.eq.s32.totalorder %s342_s0, 1  ;;  %p60_p7 = scmp.eq.s32.totalorder %s57_s24, 0 }
   0xf   : > { %p602_p8 = por %p76_p5, %p75_p3  ;;  %p133_p10 = scmp.eq.s32.totalorder %s343_s20, 1 }
  0x10   : > { %p606_p9 = por %p127_p6, %p69_p1  ;;  %p346_p12 = scmp.ge.s32.totalorder %s530_s19, 2 }
  0x11   : > { %s611_s27 = scalar_select %p60_p7, %s518_s16, %s62_s22  }
  0x12   : > { %p613_p11 = por %p133_p10, %p75_p3  ;;  %p368_p13 = scmp.lt.s32.totalorder %s530_s19, 2 }
  0x13   : > { %s163_s29 = sand.u32 1, %s518_s16   ;;  %s348_s4 = sshll.u32 %s526_s18, 1 }
  0x14   : > { %s347_s30 = sshll.u32 %s163_s29, 1  ;;  %s172_s7 = scalar_lea.hbm %s679_s1, %s348_s4 }
  0x15   : > { %s167_s8 = scalar_lea.vmem [#allocation3], %s347_s30  ;;  %s174_s10 = sshll.u32 %s172_s7, 4  ;;  %s175_s10 = int_to_ptr.hbm [resolvable:$true] %s174_s10 }
  0x16   : > { %s176_s9 = sshll.u32 %s167_s8, 4  ;;  %p361_p0 = pnand %p368_p13, %p596_p4  ;;  %s177_s9 = int_to_ptr.vmem [resolvable:$true] %s176_s9 }
  0x17   : > { %p349_p1 = scmp.ge.s32.totalorder %s530_s19, 1  ;;  %p181_p2 = scmp.lt.s32.totalorder %s530_s19, 3 }
  0x18   : > { %s164_s11 = scalar_lea.sflag [#allocation4], %s163_s29 }
  0x19   : > { %363 = dma.hbm_to_vmem [thread:$0]  (!%p361_p0), %s175_s10, 32, %s177_s9, %s164_s11  }
  0x1a   : > { %p182_p3 = pnand %p349_p1, %p181_p2 }
  0x1b   : > { %s629_s12 = sand.u32 (!%p182_p3), 1, %s514_s15  }
  0x1c   : > { %185 = sbr.rel (%p182_p3) target bundleno = 49 (0x31), region = 32  ;;  %s350_s13 = sshll.u32 (!%p182_p3), %s629_s12, 1 }
  0x1d   : > { %s188_s0 = scalar_lea.sflag (!%p182_p3), [#allocation4], %s629_s12  ;;  %s191_s20 = scalar_lea.vmem (!%p182_p3), [#allocation3], %s350_s13 }
  0x21   : > { %501 = dma.done.wait (%p602_p8), %s188_s0, 32  }
  0x22   : > { %503 = vsyncadd (%p602_p8), %s188_s0, 4294967264  ;;  %s223_s22 = sld [smem:[#allocation2]]  ;;  %s353_s23 = sshll.u32 %s522_s17, 1  ;;  %v224_v0 = vld [vmem:[%s191_s20] sm:$0x3] }
  0x23   : > { %s242_s30 = scalar_lea.hbm %s681_s3, %s353_s23  ;;  %v225_v1 = vld [vmem:[%s680_s2] sm:$0x3]  ;;  %s218_s6 = scalar_lea.vmem [#allocation6], %s350_s13 }
  0x24   : > { %s244_s7 = sshll.u32 %s218_s6, 4  ;;  %s246_s8 = sshll.u32 %s242_s30, 4  ;;  %s245_s7 = int_to_ptr.vmem [resolvable:$true] %s244_s7  ;;  %s247_s8 = int_to_ptr.hbm [resolvable:$true] %s246_s8 }
  0x25   : > { %s231_s17 = scalar_lea.sflag [#allocation5], %s629_s12  ;;  %s462_s25 = sshra.s32 %s247_s8, 4  ;;  %s463_s25 = int_to_ptr.hbm [resolvable:$true] %s462_s25 }
  0x26   : > { %s464_s9 = scalar_lea.hbm %s463_s25, 2  ;;  %s468_s0 = scalar_lea.hbm %s681_s3, 4 }
  0x27   : > { %p465_p4 = scmp.ne.s32.totalorder %s463_s25, %s464_s9  ;;  %p469_p7 = scmp.lt.s32.totalorder %s463_s25, %s681_s3 }
  0x28   : > { %v226_v2 = vstv %s223_s22  ;;  %p470_p8 = scmp.lt.s32.totalorder %s468_s0, %s464_s9 }
  0x29   : > { %v227_v3 = vmul.f32 %v226_v2, %v225_v1  ;;  %p466_p5 = pnand %p465_p4, %p606_p9 }
  0x2a   : > { %p471_p10 = por %p470_p8, %p469_p7 }
  0x2b   : > { %v228_v4 = vadd.f32 %v227_v3, %v224_v0  ;;  %p467_p6 = pneg %p466_p5 }
  0x2d   : > { %229 = vst [vmem:[%s218_s6] sm:$0x3] %v228_v4  ;;  %p472_p13 = pnand %p471_p10, %p467_p6 }
  0x2f   : > { %475 = shalt.err (!%p472_p13)
}
  0x30   : > { %358 = dma.vmem_to_hbm [thread:$0]  (%p606_p9), %s245_s7, 32, %s247_s8, %s231_s17  }
  0x31 PF: > { %s258_s12 = sand.u32 1, %s510_s14   ;;  %p365_p0 = pnand %p346_p12, %p613_p11 }
  0x32   : > { %s259_s22 = scalar_lea.sflag [#allocation5], %s258_s12 }
  0x33   : > { %p366_p1 = pneg %p365_p0 }
  0x35   : > { %505 = dma.done.wait (%p366_p1), %s259_s22, 32  }
  0x36   : > { %507 = vsyncadd (%p366_p1), %s259_s22, 4294967264  ;;  %s20_s19 = sadd.s32 1, %s530_s19   ;;  %s686_s14 = smov %s514_s15 }
  0x37   : > { %p17_p2 = scmp.ge.s32.totalorder %s20_s19, 4   ;;  %s687_s15 = smov %s518_s16 }
  0x38   : > { %s688_s16 = smov %s611_s27  ;;  %s689_s17 = smov %s526_s18 }
  0x39   : > { %s690_s18 = smov %s692_s21  ;;  %19 = sbr.rel (!%p17_p2) target bundleno = 8 (0x8), region = 80 }
  0x3e   :  { %265 = vsyncpa [#allocation4], 1 }
  0x3f   :  { %267 = vsyncpa [#allocation4 + $0x1], 1 }
  0x40   :  { %268 = vsyncpa [#allocation5], 1 }
  0x41   :  { %270 = vsyncpa [#allocation5 + $0x1], 1 }

</bundles_post_ra>
